<compile_context>
chip_gen: v7x
topology: tpu7x:2x2x1
jax: 0.10.0
libtpu: 0.0.40
codegen_flags: <defaults>
</compile_context>

<pallas_src>
import functools

import jax
import jax.numpy as jnp
from jax.experimental import pallas as pl
from jax.experimental.pallas import tpu as pltpu


_SUB = 8  # pixel sublane-rows per block


def _round_up(x, m):
    return ((x + m - 1) // m) * m


def _pick_tile(hw, max_lane):
    """Pick (lane width L, padded HW) such that 8*L divides HW_pad.

    Prefer the largest L (multiple of 128, <= max_lane) that divides HW with no
    padding at all (common segmentation case, e.g. 512*1024).  Only ragged HW
    is padded, to a multiple of 8*128."""
    cands = [l for l in (8192, 4096, 2048, 1024, 512, 256, 128) if l <= max_lane]
    if not cands:
        cands = [128]
    for lane in cands:
        if hw % (_SUB * lane) == 0:
            return lane, hw
    hw_pad = _round_up(hw, _SUB * 128)
    for lane in cands:
        if hw_pad % (_SUB * lane) == 0:
            return lane, hw_pad
    return 128, hw_pad


# ----------------------------------------------------------------------------
# Pallas kernel: per-pixel cross-entropy loss (single output stream).
# Output = loss for valid pixels, -inf for ignored pixels (ready for the
# "k-th largest loss" OHEM selection in the wrapper).
# ----------------------------------------------------------------------------
def _ohem_pixel_kernel(logits_ref, tgt_ref, loss_ref, *, ignore_label):
    # logits_ref: (1, C, 8, L)   tgt_ref/loss_ref: (1, 8, L)
    x = logits_ref[0].astype(jnp.float32)          # (C, 8, L), cast in-kernel
    tgt = tgt_ref[0]                               # (8, L) int32
    num_classes = x.shape[0]

    # numerically-stable log-sum-exp over the (leading) class axis -> VALU/EUP
    m = jnp.max(x, axis=0)                         # (8, L)
    sum_e = jnp.sum(jnp.exp(x - m[None]), axis=0)  # (8, L)
    lse = m + jnp.log(sum_e)

    valid = tgt != ignore_label                    # (8, L) bool
    tgt_c = jnp.where(valid, tgt, 0)               # ignore -> class 0

    # gather true-class logit with a small static per-class select loop
    # (no gather op; C is small: 4-19).
    # NOTE: valid labels >= C silently yield logit_t = 0 (torch.gather errors).
    logit_t = jnp.zeros_like(m)
    for c in range(num_classes):
        logit_t = logit_t + jnp.where(tgt_c == c, x[c], 0.0)

    loss = lse - logit_t                           # CE loss per pixel
    loss_ref[0] = jnp.where(valid, loss, -jnp.inf)


def _pixel_loss(logits4, target3, *, ignore_label):
    """logits4: [N, C, R, L] (original dtype), target3: [N, R, L] int32.
    Returns [N, R, L] float32 loss (-inf for ignored pixels)."""
    N, C, R, L = logits4.shape
    assert R % _SUB == 0 and L % 128 == 0
    grid = (N, R // _SUB)

    kernel = functools.partial(_ohem_pixel_kernel, ignore_label=ignore_label)
    return pl.pallas_call(
        kernel,
        out_shape=jax.ShapeDtypeStruct((N, R, L), jnp.float32),
        grid_spec=pltpu.PrefetchScalarGridSpec(
            num_scalar_prefetch=0,
            grid=grid,
            in_specs=[
                pl.BlockSpec((1, C, _SUB, L), lambda n, r: (n, 0, r, 0)),
                pl.BlockSpec((1, _SUB, L), lambda n, r: (n, r, 0)),
            ],
            out_specs=pl.BlockSpec((1, _SUB, L), lambda n, r: (n, r, 0)),
        ),
        compiler_params=pltpu.CompilerParams(
            dimension_semantics=("parallel", "parallel")),
    )(logits4, target3)


# ----------------------------------------------------------------------------
# OhemCrossEntropy forward (NUM_OUTPUTS == 1, BALANCE_WEIGHTS == (1.0,))
# ----------------------------------------------------------------------------
def ohem_cross_entropy(score_nchw, target_nhw, *, ignore_label=-1,
                       thres=0.7, min_kept=100000, lane_tile=2048):
    # TODO(synk): bilinear interpolation branch (ph != h) not implemented;
    # training inputs here use matching spatial sizes.
    N, C, H, W = score_nchw.shape
    assert target_nhw.shape == (N, H, W)
    min_kept = max(1, int(min_kept))
    HW = H * W

    L, HW_pad = _pick_tile(HW, lane_tile)
    R = HW_pad // L

    # Free reshapes (no transpose / no dtype change in HBM).
    logits = score_nchw.reshape(N, C, HW)
    target = target_nhw.reshape(N, HW).astype(jnp.int32)
    if HW_pad != HW:
        # TODO(synk): mask the ragged tail in-kernel (scalar-prefetch HW) to
        # avoid this full-tensor copy; only hit when 8*128 does not divide HW.
        logits = jnp.pad(logits, ((0, 0), (0, 0), (0, HW_pad - HW)))
        target = jnp.pad(target, ((0, 0), (0, HW_pad - HW)),
                         constant_values=ignore_label)
    logits4 = logits.reshape(N, C, R, L)    # contiguous split of HW -> free
    target3 = target.reshape(N, R, L)

    loss = _pixel_loss(logits4, target3, ignore_label=ignore_label)
    loss_flat = loss.reshape(-1)            # -inf for ignored / padded pixels
    P = loss_flat.shape[0]

    n_valid = jnp.sum((loss_flat != -jnp.inf).astype(jnp.int32))
    idx = jnp.clip(jnp.minimum(jnp.int32(min_kept), n_valid - 1), 0, P - 1)

    # OHEM selection in the loss domain: prob = exp(-loss), so
    #   prob < t      <=>  loss > -log(t)
    #   k-th smallest prob == k-th largest loss.
    l_thres = -jnp.log(jnp.float32(thres))

    # Case A (common): > idx valid pixels already have prob < thres, so the
    # k-th smallest prob is < thres and threshold == thres exactly -> no top_k.
    n_hard = jnp.sum((loss_flat > l_thres).astype(jnp.int32))
    k = min(min_kept + 1, P)

    def _case_a(_):
        return l_thres

    def _case_b(_):
        # exact k-th largest loss (== -log of k-th smallest true-class prob)
        top, _ = jax.lax.top_k(loss_flat, k)        # invalid -inf sink to tail
        kth_loss = top[jnp.minimum(idx, k - 1)]
        return jnp.minimum(kth_loss, l_thres)       # == max(prob_k, thres)

    l_thr = jax.lax.cond(n_hard > idx, _case_a, _case_b, 0)

    keep = loss_flat > l_thr                        # -inf pixels never kept
    keep_f = keep.astype(jnp.float32)
    denom = jnp.maximum(jnp.sum(keep_f), 1.0)       # guard empty set (torch -> NaN)
    return jnp.sum(jnp.where(keep, loss_flat, 0.0)) / denom


# ----------------------------------------------------------------------------
# pure-JAX reference (sanity check, prob-domain / sort-based like PyTorch)
# ----------------------------------------------------------------------------
def _reference(score_nchw, target_nhw, *, ignore_label, thres, min_kept):
    N, C, H, W = score_nchw.shape
    logits = jnp.transpose(score_nchw, (0, 2, 3, 1)).reshape(-1, C).astype(jnp.float32)
    target = target_nhw.reshape(-1).astype(jnp.int32)
    valid = target != ignore_label
    tgt_c = jnp.where(valid, target, 0)
    logprob = jax.nn.log_softmax(logits, axis=-1)
    logp_t = jnp.take_along_axis(logprob, tgt_c[:, None], axis=-1)[:, 0]
    loss = jnp.where(valid, -logp_t, 0.0)
    prob = jnp.exp(logp_t)
    n_valid = jnp.sum(valid.astype(jnp.int32))
    sorted_prob = jnp.sort(jnp.where(valid, prob, jnp.inf))
    idx = jnp.clip(jnp.minimum(jnp.int32(max(1, min_kept)), n_valid - 1),
                   0, prob.shape[0] - 1)
    threshold = jnp.maximum(jnp.take(sorted_prob, idx), jnp.float32(thres))
    keep = (valid & (prob < threshold)).astype(jnp.float32)
    return jnp.sum(loss * keep) / jnp.maximum(jnp.sum(keep), 1.0)


if __name__ == "__main__":
    key = jax.random.PRNGKey(0)
    k1, k2, k3 = jax.random.split(key, 3)

    N, C, H, W = 2, 4, 16, 16
    ignore_label, thres, min_kept = -1, 0.7, 100

    score = jax.random.normal(k1, (N, C, H, W), dtype=jnp.float32)
    target = jax.random.randint(k2, (N, H, W), 0, C, dtype=jnp.int32)
    # sprinkle some ignored pixels
    ignore_mask = jax.random.uniform(k3, (N, H, W)) < 0.1
    target = jnp.where(ignore_mask, ignore_label, target)

    fn = jax.jit(functools.partial(
        ohem_cross_entropy, ignore_label=ignore_label,
        thres=thres, min_kept=min_kept))
    out = jax.block_until_ready(fn(score, target))

    ref = _reference(score, target, ignore_label=ignore_label,
                     thres=thres, min_kept=min_kept)
    assert jnp.isfinite(out), "loss is not finite"
    assert jnp.abs(out - ref) < 1e-4, (out, ref)

    print("KERNEL_OK")
</pallas_src>

<mosaic_0001>
module attributes {stable_mosaic.version = 11 : i64} {
  func.func @_ohem_pixel_kernel(%arg0: i32, %arg1: i32, %arg2: memref<1x4x8x128xf32, #tpu.memory_space<vmem>>, %arg3: memref<1x8x128xi32, #tpu.memory_space<vmem>>, %arg4: memref<1x8x128xf32, #tpu.memory_space<vmem>>) attributes {dimension_semantics = [#tpu.dimension_semantics<parallel>, #tpu.dimension_semantics<parallel>], iteration_bounds = array<i64: 2, 1>, scalar_prefetch = 0 : i64, scratch_operands = 0 : i64, tpu.core_type = #tpu.core_type<tc>, window_params = [{transform_indices = @transform_0, window_bounds = array<i64: 1, 4, 8, 128>}, {transform_indices = @transform_1, window_bounds = array<i64: 1, 8, 128>}, {transform_indices = @transform_2, window_bounds = array<i64: 1, 8, 128>}]} {
    %c0 = arith.constant 0 : index
    %c0_0 = arith.constant 0 : index
    %c0_1 = arith.constant 0 : index
    %c0_2 = arith.constant 0 : index
    %0 = vector.load %arg2[%c0, %c0_0, %c0_1, %c0_2] : memref<1x4x8x128xf32, #tpu.memory_space<vmem>>, vector<1x4x8x128xf32>
    %1 = vector.shape_cast %0 : vector<1x4x8x128xf32> to vector<4x8x128xf32>
    %c0_3 = arith.constant 0 : index
    %c0_4 = arith.constant 0 : index
    %c0_5 = arith.constant 0 : index
    %2 = vector.load %arg3[%c0_3, %c0_4, %c0_5] : memref<1x8x128xi32, #tpu.memory_space<vmem>>, vector<1x8x128xi32>
    %3 = vector.shape_cast %2 : vector<1x8x128xi32> to vector<8x128xi32>
    %cst = arith.constant dense<0xFF800000> : vector<8x128xf32>
    %4 = vector.multi_reduction <maximumf>, %1, %cst [0] : vector<4x8x128xf32> to vector<8x128xf32>
    %5 = vector.shape_cast %4 : vector<8x128xf32> to vector<1x8x128xf32>
    %6 = vector.broadcast %5 : vector<1x8x128xf32> to vector<4x8x128xf32>
    %7 = arith.subf %1, %6 : vector<4x8x128xf32>
    %8 = math.exp %7 : vector<4x8x128xf32>
    %cst_6 = arith.constant dense<0.000000e+00> : vector<8x128xf32>
    %9 = vector.multi_reduction <add>, %8, %cst_6 [0] : vector<4x8x128xf32> to vector<8x128xf32>
    %10 = math.log %9 : vector<8x128xf32>
    %11 = arith.addf %4, %10 : vector<8x128xf32>
    %c-1_i32 = arith.constant -1 : i32
    %12 = vector.broadcast %c-1_i32 : i32 to vector<8x128xi32>
    %13 = arith.cmpi ne, %3, %12 : vector<8x128xi32>
    %c0_i32 = arith.constant 0 : i32
    %14 = vector.broadcast %c0_i32 : i32 to vector<8x128xi32>
    %15 = arith.select %13, %3, %14 : vector<8x128xi1>, vector<8x128xi32>
    %cst_7 = arith.constant 0.000000e+00 : f32
    %16 = vector.broadcast %cst_7 : f32 to vector<8x128xf32>
    %c0_i32_8 = arith.constant 0 : i32
    %17 = vector.broadcast %c0_i32_8 : i32 to vector<8x128xi32>
    %18 = arith.cmpi eq, %15, %17 : vector<8x128xi32>
    %19 = vector.extract_strided_slice %1 {offsets = [0, 0, 0], sizes = [1, 8, 128], strides = [1, 1, 1]} : vector<4x8x128xf32> to vector<1x8x128xf32>
    %20 = vector.shape_cast %19 : vector<1x8x128xf32> to vector<8x128xf32>
    %cst_9 = arith.constant 0.000000e+00 : f32
    %21 = vector.broadcast %cst_9 : f32 to vector<8x128xf32>
    %22 = arith.select %18, %20, %21 : vector<8x128xi1>, vector<8x128xf32>
    %23 = arith.addf %16, %22 : vector<8x128xf32>
    %c1_i32 = arith.constant 1 : i32
    %24 = vector.broadcast %c1_i32 : i32 to vector<8x128xi32>
    %25 = arith.cmpi eq, %15, %24 : vector<8x128xi32>
    %26 = vector.extract_strided_slice %1 {offsets = [1, 0, 0], sizes = [1, 8, 128], strides = [1, 1, 1]} : vector<4x8x128xf32> to vector<1x8x128xf32>
    %27 = vector.shape_cast %26 : vector<1x8x128xf32> to vector<8x128xf32>
    %cst_10 = arith.constant 0.000000e+00 : f32
    %28 = vector.broadcast %cst_10 : f32 to vector<8x128xf32>
    %29 = arith.select %25, %27, %28 : vector<8x128xi1>, vector<8x128xf32>
    %30 = arith.addf %23, %29 : vector<8x128xf32>
    %c2_i32 = arith.constant 2 : i32
    %31 = vector.broadcast %c2_i32 : i32 to vector<8x128xi32>
    %32 = arith.cmpi eq, %15, %31 : vector<8x128xi32>
    %33 = vector.extract_strided_slice %1 {offsets = [2, 0, 0], sizes = [1, 8, 128], strides = [1, 1, 1]} : vector<4x8x128xf32> to vector<1x8x128xf32>
    %34 = vector.shape_cast %33 : vector<1x8x128xf32> to vector<8x128xf32>
    %cst_11 = arith.constant 0.000000e+00 : f32
    %35 = vector.broadcast %cst_11 : f32 to vector<8x128xf32>
    %36 = arith.select %32, %34, %35 : vector<8x128xi1>, vector<8x128xf32>
    %37 = arith.addf %30, %36 : vector<8x128xf32>
    %c3_i32 = arith.constant 3 : i32
    %38 = vector.broadcast %c3_i32 : i32 to vector<8x128xi32>
    %39 = arith.cmpi eq, %15, %38 : vector<8x128xi32>
    %40 = vector.extract_strided_slice %1 {offsets = [3, 0, 0], sizes = [1, 8, 128], strides = [1, 1, 1]} : vector<4x8x128xf32> to vector<1x8x128xf32>
    %41 = vector.shape_cast %40 : vector<1x8x128xf32> to vector<8x128xf32>
    %cst_12 = arith.constant 0.000000e+00 : f32
    %42 = vector.broadcast %cst_12 : f32 to vector<8x128xf32>
    %43 = arith.select %39, %41, %42 : vector<8x128xi1>, vector<8x128xf32>
    %44 = arith.addf %37, %43 : vector<8x128xf32>
    %45 = arith.subf %11, %44 : vector<8x128xf32>
    %cst_13 = arith.constant 0xFF800000 : f32
    %46 = vector.broadcast %cst_13 : f32 to vector<8x128xf32>
    %47 = arith.select %13, %45, %46 : vector<8x128xi1>, vector<8x128xf32>
    %c0_14 = arith.constant 0 : index
    %c0_15 = arith.constant 0 : index
    %c0_16 = arith.constant 0 : index
    %48 = vector.load %arg4[%c0_14, %c0_15, %c0_16] : memref<1x8x128xf32, #tpu.memory_space<vmem>>, vector<1x8x128xf32>
    %49 = vector.shape_cast %48 : vector<1x8x128xf32> to vector<8x128xf32>
    %50 = vector.shape_cast %47 : vector<8x128xf32> to vector<1x8x128xf32>
    tpu.vector_store %arg4[%c0_14, %c0_15, %c0_16], %50 {strides = array<i32>} : memref<1x8x128xf32, #tpu.memory_space<vmem>>, vector<1x8x128xf32>,
    return
  }
  func.func @transform_0(%arg0: i32, %arg1: i32) -> (i32, i32, i32, i32) {
    %c0_i32 = arith.constant 0 : i32
    %c0_i32_0 = arith.constant 0 : i32
    %c0_i32_1 = arith.constant 0 : i32
    return %arg0, %c0_i32, %arg1, %c0_i32_0 : i32, i32, i32, i32
  }
  func.func @transform_1(%arg0: i32, %arg1: i32) -> (i32, i32, i32) {
    %c0_i32 = arith.constant 0 : i32
    %c0_i32_0 = arith.constant 0 : i32
    return %arg0, %arg1, %c0_i32 : i32, i32, i32
  }
  func.func @transform_2(%arg0: i32, %arg1: i32) -> (i32, i32, i32) {
    %c0_i32 = arith.constant 0 : i32
    %c0_i32_0 = arith.constant 0 : i32
    return %arg0, %arg1, %c0_i32 : i32, i32, i32
  }
}

</mosaic_0001>

<bundles_post_ra>
// kernel: ohem_cross_entropy.1
= control target key start
LH: loop header
LB: loop body
LE: loop exit
PB: predicated region body
PF: predicated region fallthrough
CT: control target
= control target key end

     0   :  { %s421_s9 = smov 0   ;;  %s423_s10 = smov 0   ;;  %s467_s0 = inlined_call_operand.vmem [shape: f32[2,4,8,128], index: 0, kind: input, shape index: {}]   ;;  %s468_s1 = inlined_call_operand.vmem [shape: s32[2,8,128], index: 1, kind: input, shape index: {}]   ;;  %s469_s2 = inlined_call_operand.vmem [shape: f32[2,8,128], index: 2, kind: output, shape index: {}]  }
   0x1   :  { %s425_s11 = smov 0  }
   0x2 LB: > { %s24_s12 = sadd.s32 1, %s400_s10  ;;  %p340_p0 = scmp.ge.s32.totalorder %s404_s11, 1  ;;  %s404_s11 = sphi %s425_s11, %s12_s11   ;;  %s400_s10 = sphi %s423_s10, %s471_s10   ;;  %s396_s9 = sphi %s421_s9, %s470_s9  }
   0x3   : > { %p26_p1 = scmp.ge.s32.totalorder %s24_s12, 2  ;;  %p145_p2 = scmp.lt.s32.totalorder %s404_s11, 3 }
   0x5   : > { %s473_s12 = smov (%p26_p1, %s24_s12), 0  ;;  %p146_p3 = pnand %p340_p0, %p145_p2 }
   0x6   : > { %p179_p4 = scmp.lt.s32.totalorder (!%p146_p3), %s396_s9, 1 }
   0x7   : > { %149 = sbr.rel (%p146_p3) target bundleno = 64 (0x40), region = 28 }
   0xe   : > { %s475_s9 = smov (!%p179_p4, %s396_s9), 1 }
   0xf   : > { %s347_s13 = sshll.u32 %s475_s9, 5  ;;  %s343_s17 = sshll.u32 %s475_s9, 3 }
  0x10   : > { %s186_s16 = scalar_lea.vmem %s467_s0, %s347_s13  ;;  %s193_s20 = scalar_lea.vmem %s468_s1, %s343_s17 }
  0x11   : > { %v201_v0 = vld [vmem:[%s186_s16] sm:$0xff]  ;;  %v202_v1 = vld [vmem:[%s186_s16 + $0x8] sm:$0xff]  ;;  %v203_v2 = vld [vmem:[%s186_s16 + $0x10] sm:$0xff]  ;;  %s200_s23 = scalar_lea.vmem %s469_s2, %s343_s17 }
  0x12   : > { %v204_v3 = vld [vmem:[%s186_s16 + $0x18] sm:$0xff]  ;;  %v206_v4 = vmax.f32 %v201_v0, %v202_v1  ;;  %v205_v15 = vld [vmem:[%s193_s20] sm:$0xff] }
  0x13   : > { %v207_v5 = vmax.f32 %v203_v2, %v204_v3  ;;  %vm227_vm0 = vcmp.ne.s32.totalorder %v205_v15, 4294967295 }
  0x14   : > { %v228_v20 = vsel %vm227_vm0, %v205_v15, 0 }
  0x15   : > { %v208_v6 = vmax.f32 %v206_v4, %v207_v5  ;;  %vm229_vm1 = vcmp.eq.s32.totalorder %v228_v20, 0  ;;  %vm232_vm2 = vcmp.eq.s32.totalorder %v228_v20, 1  ;;  %vm235_vm3 = vcmp.eq.s32.totalorder %v228_v20, 2 }
  0x16   : > { %v230_v24 = vsel %vm229_vm1, %v201_v0, 0.0  ;;  %v233_v25 = vsel %vm232_vm2, %v202_v1, 0.0  ;;  %v236_v27 = vsel %vm235_vm3, %v203_v2, 0.0  ;;  %vm238_vm4 = vcmp.eq.s32.totalorder %v228_v20, 3 }
  0x17   : > { %v209_v7 = vsub.f32 %v201_v0, %v208_v6  ;;  %v210_v8 = vsub.f32 %v202_v1, %v208_v6  ;;  %v211_v9 = vsub.f32 %v203_v2, %v208_v6  ;;  %v212_v10 = vsub.f32 %v204_v3, %v208_v6 }
  0x18   : > { %v234_v26 = vadd.f32 %v233_v25, %v230_v24  ;;  %v239_v29 = vsel %vm238_vm4, %v204_v3, 0.0 }
  0x19   : > { %v213_v11 = vmul.f32 1.442695, %v209_v7  ;;  %v215_v12 = vmul.f32 1.442695, %v210_v8  ;;  %v217_v13 = vmul.f32 1.442695, %v211_v9 }
  0x1a   : > { %v219_v14 = vmul.f32 1.442695, %v212_v10  ;;  %v237_v28 = vadd.f32 %v236_v27, %v234_v26 }
  0x1b   : > { %372 = vpow2.f32 %v213_v11 }
  0x1c   : > { %374 = vpow2.f32 %v215_v12  ;;  %v240_v32 = vadd.f32 %v239_v29, %v237_v28 }
  0x1d   : > { %376 = vpow2.f32 %v217_v13 }
  0x1e   : > { %378 = vpow2.f32 %v219_v14 }
  0x25   : > { %v373_v16 = vpop.eup %372 }
  0x26   : > { %v375_v17 = vpop.eup %374 }
  0x27   : > { %v377_v18 = vpop.eup %376  ;;  %v221_v19 = vadd.f32 %v375_v17, %v373_v16 }
  0x28   : > { %v379_v21 = vpop.eup %378 }
  0x29   : > { %v222_v22 = vadd.f32 %v377_v18, %v221_v19 }
  0x2b   : > { %v223_v23 = vadd.f32 %v379_v21, %v222_v22 }
  0x2d   : > { %380 = vlog2.f32 %v223_v23 }
  0x37   : > { %v381_v30 = vpop.eup %380 }
  0x38   : > { %v225_v31 = vmul.f32 0.6931472, %v381_v30 }
  0x3a   : > { %v226_v33 = vadd.f32 %v225_v31, %v208_v6 }
  0x3c   : > { %v241_v34 = vsub.f32 %v226_v33, %v240_v32 }
  0x3e   : > { %v242_v35 = vsel %vm227_vm0, %v241_v34, -inf }
  0x3f   : > { %243 = vst [vmem:[%s200_s23] sm:$0xff] %v242_v35 }
  0x40 PF: > { %s12_s11 = sadd.s32 1, %s404_s11   ;;  %s470_s9 = smov %s400_s10 }
  0x41   : > { %p9_p5 = scmp.ge.s32.totalorder %s12_s11, 4   ;;  %s471_s10 = smov %s473_s12 }
  0x43   :  { %11 = sbr.rel (!%p9_p5) target bundleno = 2 (0x2), region = 61 }

</bundles_post_ra>
